<compile_context>
chip_gen: v5e
topology: v5e:2x2
jax: 0.10.0
libtpu: 0.0.40
codegen_flags: <defaults>
</compile_context>

<pallas_src>
import functools
import math

import jax
import jax.numpy as jnp
from jax.experimental import pallas as pl
from jax.experimental.pallas import tpu as pltpu


# ------------------------- model hyper-parameters ---------------------------
INPUT_DIM = 13          # length of a rotated state
SELF_STATE_DIM = 6
MLP1_DIMS = [32, 32]    # mlp1: tanh after every layer (last_relu=True)
MLP2_DIMS = [32, 16]    # mlp2: tanh between layers, none after last
ATTENTION_DIMS = [32, 1]
WITH_GLOBAL_STATE = True

BATCH = 2
NUM_HUMANS = 5


# ------------------------------ Pallas kernel -------------------------------
def feature_ext_kernel(x_ref, seg_ref, segt_ref,
                       w1a_ref, b1a_ref, w1b_ref, b1b_ref,
                       wf_ref, bf_ref, wg_ref, w3_ref, b3_ref,
                       out_ref, *, num_humans):
    f32 = jnp.float32
    n = num_humans
    h2 = out_ref.shape[1]            # mlp2 output width (16)

    xf = x_ref[...]                  # (TBN, D)   flattened TB*N rows
    seg = seg_ref[...]               # (TB, TBN)  0/1 segment matrix (host-built)
    seg_t = segt_ref[...]            # (TBN, TB)  its transpose

    # mlp1: Linear -> tanh -> Linear -> tanh   (last_relu=True => tanh on last)
    a1 = jnp.tanh(jnp.dot(xf, w1a_ref[...], preferred_element_type=f32)
                  + b1a_ref[...])
    m1 = jnp.tanh(jnp.dot(a1, w1b_ref[...], preferred_element_type=f32)
                  + b1b_ref[...])                                 # (TBN, 32)

    # Global state: per-batch mean of mlp1 output, pushed through the
    # zero-padded global half of the attention weight, broadcast back to rows
    # with the (exact 0/1) transposed segment matrix.
    gmean = jnp.dot(seg, m1, preferred_element_type=f32) * (1.0 / n)   # (TB, 32)
    gproj = jnp.dot(gmean, wg_ref[...], preferred_element_type=f32)    # (TB, 64)
    grows = jnp.dot(seg_t, gproj, preferred_element_type=f32)          # (TBN, 64)

    # Fused [mlp2 first layer | attention first layer]: one 64-lane matmul.
    fused = jnp.tanh(jnp.dot(m1, wf_ref[...], preferred_element_type=f32)
                     + bf_ref[...] + grows)                            # (TBN, 64)

    # Fused block-diagonal [mlp2 second layer | attention out | const-1 lane].
    # Lane layout of r: [0:16] mlp2 output, [16] attention score, [17] == 1.0.
    r = jnp.dot(fused, w3_ref[...], preferred_element_type=f32) + b3_ref[...]

    # Masked softmax weights (exact PyTorch semantics incl. the != 0 mask;
    # inherits its numerical fragility: no max-subtraction, all-zero scores
    # give 0/0 for that batch only).
    scores = r[:, h2:h2 + 1]                                           # (TBN, 1)
    se = jnp.exp(scores) * (scores != 0.0).astype(f32)

    # One segmented matmul yields the weighted-feature numerator (lanes 0:16)
    # and, via the constant-1 lane, the softmax denominator (lane 17).
    pooled = jnp.dot(seg, se * r, preferred_element_type=f32)          # (TB, 18)
    inv_den = pl.reciprocal(pooled[:, h2 + 1:h2 + 2], approx=False)    # (TB, 1)

    # Single contiguous 16-lane store (self-state is concatenated on host).
    out_ref[...] = pooled[:, :h2] * inv_den
    # TODO(synk): the PyTorch module also stashes `attention_weights` (a host
    # numpy side-effect for visualization); not emitted here.


# ------------------------------- host wrapper --------------------------------
def feature_ext(state, params, self_state_dim=SELF_STATE_DIM, tb_max=64):
    (w1a, b1a, w1b, b1b, w2a, b2a, w2b, b2b, wa1, ba1, wa2, ba2) = params
    B, N, D = state.shape
    h1 = w1b.shape[1]

    # Split attention first layer into local / global halves (host side).
    if wa1.shape[0] == 2 * h1:
        wa1_top, wa1_bot = wa1[:h1], wa1[h1:]
    else:  # with_global_state=False
        wa1_top, wa1_bot = wa1, jnp.zeros((h1, wa1.shape[1]), wa1.dtype)

    # Fused weights (see kernel comments).
    wf_ = jnp.concatenate([w2a, wa1_top], axis=1)                   # (32, 64)
    bf_ = jnp.concatenate([b2a, ba1], axis=1)                       # (1, 64)
    wg_ = jnp.concatenate([jnp.zeros_like(w2a), wa1_bot], axis=1)   # (32, 64)
    h2a, a1w, h2b = w2a.shape[1], wa1.shape[1], w2b.shape[1]
    # Augmented block-diagonal [mlp2-layer2 | attn-out | const-1 lane] weight.
    w3_ = jnp.zeros((h2a + a1w, h2b + 2), jnp.float32)
    w3_ = w3_.at[:h2a, :h2b].set(w2b)
    w3_ = w3_.at[h2a:, h2b:h2b + 1].set(wa2)                        # (64, 18)
    b3_ = jnp.concatenate(
        [b2b, ba2, jnp.ones((1, 1), jnp.float32)], axis=1)          # (1, 18)

    # ---- batch tiling ------------------------------------------------------
    # TB batch elements per grid step; multiple of 8 so the flattened
    # (TB*N, D) block satisfies the sublane rule for any N.  For B >= 16 cap
    # TB so there are >= 2 grid steps (both v7x TensorCores get work); the
    # segment-reduction matmul cost grows with TB, hence the modest default.
    TB = min(tb_max, B)
    if B >= 16:
        half = -(-B // 2)
        TB = min(TB, -(-half // 8) * 8)
    TB = max(8, -(-TB // 8) * 8)
    B_pad = -(-B // TB) * TB
    grid_steps = B_pad // TB
    if B_pad != B:
        pad = jnp.broadcast_to(state[-1:], (B_pad - B, N, D))  # edge-replicate
        state_p = jnp.concatenate([state, pad], axis=0)
    else:
        state_p = state
    xf = state_p.reshape(B_pad * N, D).astype(jnp.float32)

    # Segment matrices built once on the host (constant index_map => DMA'd
    # once, resident in VMEM across all grid steps).
    tbn = TB * N
    batch_of_row = jnp.arange(tbn) // N
    seg = (batch_of_row[None, :] ==
           jnp.arange(TB)[:, None]).astype(jnp.float32)             # (TB, TBN)
    seg_t = seg.T                                                   # (TBN, TB)

    weights = (w1a, b1a, w1b, b1b, wf_, bf_, wg_, w3_, b3_)

    def rep_spec(arr):
        nd = arr.ndim
        return pl.BlockSpec(arr.shape, lambda g, _nd=nd: (0,) * _nd)

    # Advisory cost estimate (kernel is tiny; launch-dominated at small B).
    flops = int(2 * B_pad * N * (D * 32 + 32 * 32 + 32 * 64 + 64 * 18)
                + 2 * B_pad * (N * 32 + 32 * 64 + N * 64 + N * 18))
    transcendentals = int(B_pad * N * (32 + 32 + 64 + 1))
    bytes_accessed = int(4 * (xf.size + B_pad * h2b + seg.size + seg_t.size
                              + sum(int(w.size) for w in weights)))
    cost = pl.CostEstimate(flops=flops, transcendentals=transcendentals,
                           bytes_accessed=bytes_accessed)

    kernel = functools.partial(feature_ext_kernel, num_humans=N)
    wf_out = pl.pallas_call(
        kernel,
        out_shape=jax.ShapeDtypeStruct((B_pad, h2b), jnp.float32),
        grid=(grid_steps,),
        in_specs=[pl.BlockSpec((TB * N, D), lambda g: (g, 0)),
                  pl.BlockSpec((TB, TB * N), lambda g: (0, 0)),
                  pl.BlockSpec((TB * N, TB), lambda g: (0, 0))]
                 + [rep_spec(p) for p in weights],
        out_specs=pl.BlockSpec((TB, h2b), lambda g: (g, 0)),
        compiler_params=pltpu.CompilerParams(
            dimension_semantics=("parallel",)),
        cost_estimate=cost,
    )(xf, seg, seg_t, *weights)

    # Self-state handled on the host: trivial slice + concat, fused by XLA.
    self_state = state[:, 0, :self_state_dim].astype(jnp.float32)
    return jnp.concatenate([self_state, wf_out[:B]], axis=1)


# ----------------------- deterministic parameter init ------------------------
def _linear_params(key, fan_in, fan_out):
    # Mirrors torch.nn.Linear default init: U(-1/sqrt(fan_in), 1/sqrt(fan_in))
    kw, kb = jax.random.split(key)
    bound = 1.0 / math.sqrt(fan_in)
    w = jax.random.uniform(kw, (fan_in, fan_out), jnp.float32, -bound, bound)
    b = jax.random.uniform(kb, (1, fan_out), jnp.float32, -bound, bound)
    return w, b


def init_params(key):
    keys = jax.random.split(key, 6)
    w1a, b1a = _linear_params(keys[0], INPUT_DIM, MLP1_DIMS[0])
    w1b, b1b = _linear_params(keys[1], MLP1_DIMS[0], MLP1_DIMS[1])
    w2a, b2a = _linear_params(keys[2], MLP1_DIMS[1], MLP2_DIMS[0])
    w2b, b2b = _linear_params(keys[3], MLP2_DIMS[0], MLP2_DIMS[1])
    attn_in = MLP1_DIMS[1] * (2 if WITH_GLOBAL_STATE else 1)
    wa1, ba1 = _linear_params(keys[4], attn_in, ATTENTION_DIMS[0])
    wa2, ba2 = _linear_params(keys[5], ATTENTION_DIMS[0], ATTENTION_DIMS[1])
    return (w1a, b1a, w1b, b1b, w2a, b2a, w2b, b2b, wa1, ba1, wa2, ba2)


# ------------------------- pure-JAX reference (check) -------------------------
def feature_ext_ref(state, params, self_state_dim=SELF_STATE_DIM):
    (w1a, b1a, w1b, b1b, w2a, b2a, w2b, b2b, wa1, ba1, wa2, ba2) = params
    B, N, D = state.shape
    x = state.reshape(-1, D)
    m1 = jnp.tanh(jnp.tanh(x @ w1a + b1a) @ w1b + b1b)
    m2 = jnp.tanh(m1 @ w2a + b2a) @ w2b + b2b
    gs = jnp.mean(m1.reshape(B, N, -1), axis=1, keepdims=True)
    gs = jnp.broadcast_to(gs, (B, N, m1.shape[-1])).reshape(-1, m1.shape[-1])
    att_in = jnp.concatenate([m1, gs], axis=1)
    scores = (jnp.tanh(att_in @ wa1 + ba1) @ wa2 + ba2).reshape(B, N)
    se = jnp.exp(scores) * (scores != 0.0).astype(jnp.float32)
    w = (se / jnp.sum(se, axis=1, keepdims=True))[:, :, None]
    wf = jnp.sum(w * m2.reshape(B, N, -1), axis=1)
    return jnp.concatenate([state[:, 0, :self_state_dim], wf], axis=1)


# ----------------------------------- main ------------------------------------
if __name__ == "__main__":
    key = jax.random.PRNGKey(0)
    k_state, k_params, k_state2, k_state3 = jax.random.split(key, 4)
    params = init_params(k_params)

    # Small demo (single grid step, batch padded up to a multiple of 8).
    state = jax.random.normal(
        k_state, (BATCH, NUM_HUMANS, INPUT_DIM), dtype=jnp.float32)
    out = jax.block_until_ready(feature_ext(state, params))
    ref = feature_ext_ref(state, params)
    assert out.shape == (BATCH, SELF_STATE_DIM + MLP2_DIMS[-1]), out.shape
    assert jnp.allclose(out, ref, atol=1e-4, rtol=1e-4), (
        "mismatch vs pure-JAX reference (single-step)")

    # Exercise the multi-grid-step + batch-padding path.
    state2 = jax.random.normal(
        k_state2, (11, NUM_HUMANS, INPUT_DIM), dtype=jnp.float32)
    out2 = jax.block_until_ready(feature_ext(state2, params, tb_max=8))
    ref2 = feature_ext_ref(state2, params)
    assert out2.shape == (11, SELF_STATE_DIM + MLP2_DIMS[-1]), out2.shape
    assert jnp.allclose(out2, ref2, atol=1e-4, rtol=1e-4), (
        "mismatch vs pure-JAX reference (multi-step)")

    # Exercise the >=2-grid-step (two-TensorCore) path for B >= 16.
    state3 = jax.random.normal(
        k_state3, (37, NUM_HUMANS, INPUT_DIM), dtype=jnp.float32)
    out3 = jax.block_until_ready(feature_ext(state3, params))
    ref3 = feature_ext_ref(state3, params)
    assert out3.shape == (37, SELF_STATE_DIM + MLP2_DIMS[-1]), out3.shape
    assert jnp.allclose(out3, ref3, atol=1e-4, rtol=1e-4), (
        "mismatch vs pure-JAX reference (B>=16, 2+ steps)")

    print("KERNEL_OK")
</pallas_src>

<mosaic_0001>
module attributes {stable_mosaic.version = 11 : i64} {
  func.func @feature_ext_kernel(%arg0: i32, %arg1: memref<40x13xf32, #tpu.memory_space<vmem>>, %arg2: memref<8x40xf32, #tpu.memory_space<vmem>>, %arg3: memref<40x8xf32, #tpu.memory_space<vmem>>, %arg4: memref<13x32xf32, #tpu.memory_space<vmem>>, %arg5: memref<1x32xf32, #tpu.memory_space<vmem>>, %arg6: memref<32x32xf32, #tpu.memory_space<vmem>>, %arg7: memref<1x32xf32, #tpu.memory_space<vmem>>, %arg8: memref<32x64xf32, #tpu.memory_space<vmem>>, %arg9: memref<1x64xf32, #tpu.memory_space<vmem>>, %arg10: memref<32x64xf32, #tpu.memory_space<vmem>>, %arg11: memref<64x18xf32, #tpu.memory_space<vmem>>, %arg12: memref<1x18xf32, #tpu.memory_space<vmem>>, %arg13: memref<8x16xf32, #tpu.memory_space<vmem>>) attributes {dimension_semantics = [#tpu.dimension_semantics<parallel>], iteration_bounds = array<i64: 1>, scalar_prefetch = 0 : i64, scratch_operands = 0 : i64, tpu.core_type = #tpu.core_type<tc>, window_params = [{transform_indices = @transform_0, window_bounds = array<i64: 40, 13>}, {pipeline_mode = #tpu.pipeline_mode<synchronous>, transform_indices = @transform_1, window_bounds = array<i64: 8, 40>}, {pipeline_mode = #tpu.pipeline_mode<synchronous>, transform_indices = @transform_2, window_bounds = array<i64: 40, 8>}, {pipeline_mode = #tpu.pipeline_mode<synchronous>, transform_indices = @transform_3, window_bounds = array<i64: 13, 32>}, {pipeline_mode = #tpu.pipeline_mode<synchronous>, transform_indices = @transform_4, window_bounds = array<i64: 1, 32>}, {pipeline_mode = #tpu.pipeline_mode<synchronous>, transform_indices = @transform_5, window_bounds = array<i64: 32, 32>}, {pipeline_mode = #tpu.pipeline_mode<synchronous>, transform_indices = @transform_6, window_bounds = array<i64: 1, 32>}, {pipeline_mode = #tpu.pipeline_mode<synchronous>, transform_indices = @transform_7, window_bounds = array<i64: 32, 64>}, {pipeline_mode = #tpu.pipeline_mode<synchronous>, transform_indices = @transform_8, window_bounds = array<i64: 1, 64>}, {pipeline_mode = #tpu.pipeline_mode<synchronous>, transform_indices = @transform_9, window_bounds = array<i64: 32, 64>}, {pipeline_mode = #tpu.pipeline_mode<synchronous>, transform_indices = @transform_10, window_bounds = array<i64: 64, 18>}, {pipeline_mode = #tpu.pipeline_mode<synchronous>, transform_indices = @transform_11, window_bounds = array<i64: 1, 18>}, {transform_indices = @transform_12, window_bounds = array<i64: 8, 16>}]} {
    %c0 = arith.constant 0 : index
    %c0_0 = arith.constant 0 : index
    %0 = vector.load %arg1[%c0, %c0_0] : memref<40x13xf32, #tpu.memory_space<vmem>>, vector<40x13xf32>
    %c0_1 = arith.constant 0 : index
    %c0_2 = arith.constant 0 : index
    %1 = vector.load %arg2[%c0_1, %c0_2] : memref<8x40xf32, #tpu.memory_space<vmem>>, vector<8x40xf32>
    %c0_3 = arith.constant 0 : index
    %c0_4 = arith.constant 0 : index
    %2 = vector.load %arg3[%c0_3, %c0_4] : memref<40x8xf32, #tpu.memory_space<vmem>>, vector<40x8xf32>
    %c0_5 = arith.constant 0 : index
    %c0_6 = arith.constant 0 : index
    %3 = vector.load %arg4[%c0_5, %c0_6] : memref<13x32xf32, #tpu.memory_space<vmem>>, vector<13x32xf32>
    %cst = arith.constant dense<0.000000e+00> : vector<40x32xf32>
    %4 = tpu.matmul %0, %3, %cst {dimension_numbers = #tpu.dot_dimension_numbers<[1], [0], [0], [1], [0, 0, 1, 1], [], []>} : vector<40x13xf32>, vector<13x32xf32>, vector<40x32xf32> -> vector<40x32xf32>
    %c0_7 = arith.constant 0 : index
    %c0_8 = arith.constant 0 : index
    %5 = vector.load %arg5[%c0_7, %c0_8] : memref<1x32xf32, #tpu.memory_space<vmem>>, vector<1x32xf32>
    %6 = vector.broadcast %5 : vector<1x32xf32> to vector<40x32xf32>
    %7 = arith.addf %4, %6 : vector<40x32xf32>
    %8 = math.tanh %7 : vector<40x32xf32>
    %c0_9 = arith.constant 0 : index
    %c0_10 = arith.constant 0 : index
    %9 = vector.load %arg6[%c0_9, %c0_10] : memref<32x32xf32, #tpu.memory_space<vmem>>, vector<32x32xf32>
    %cst_11 = arith.constant dense<0.000000e+00> : vector<40x32xf32>
    %10 = tpu.matmul %8, %9, %cst_11 {dimension_numbers = #tpu.dot_dimension_numbers<[1], [0], [0], [1], [0, 0, 1, 1], [], []>} : vector<40x32xf32>, vector<32x32xf32>, vector<40x32xf32> -> vector<40x32xf32>
    %c0_12 = arith.constant 0 : index
    %c0_13 = arith.constant 0 : index
    %11 = vector.load %arg7[%c0_12, %c0_13] : memref<1x32xf32, #tpu.memory_space<vmem>>, vector<1x32xf32>
    %12 = vector.broadcast %11 : vector<1x32xf32> to vector<40x32xf32>
    %13 = arith.addf %10, %12 : vector<40x32xf32>
    %14 = math.tanh %13 : vector<40x32xf32>
    %cst_14 = arith.constant dense<0.000000e+00> : vector<8x32xf32>
    %15 = tpu.matmul %1, %14, %cst_14 {dimension_numbers = #tpu.dot_dimension_numbers<[1], [0], [0], [1], [0, 0, 1, 1], [], []>} : vector<8x40xf32>, vector<40x32xf32>, vector<8x32xf32> -> vector<8x32xf32>
    %cst_15 = arith.constant 2.000000e-01 : f32
    %16 = vector.broadcast %cst_15 : f32 to vector<8x32xf32>
    %17 = arith.mulf %15, %16 : vector<8x32xf32>
    %c0_16 = arith.constant 0 : index
    %c0_17 = arith.constant 0 : index
    %18 = vector.load %arg10[%c0_16, %c0_17] : memref<32x64xf32, #tpu.memory_space<vmem>>, vector<32x64xf32>
    %cst_18 = arith.constant dense<0.000000e+00> : vector<8x64xf32>
    %19 = tpu.matmul %17, %18, %cst_18 {dimension_numbers = #tpu.dot_dimension_numbers<[1], [0], [0], [1], [0, 0, 1, 1], [], []>} : vector<8x32xf32>, vector<32x64xf32>, vector<8x64xf32> -> vector<8x64xf32>
    %cst_19 = arith.constant dense<0.000000e+00> : vector<40x64xf32>
    %20 = tpu.matmul %2, %19, %cst_19 {dimension_numbers = #tpu.dot_dimension_numbers<[1], [0], [0], [1], [0, 0, 1, 1], [], []>} : vector<40x8xf32>, vector<8x64xf32>, vector<40x64xf32> -> vector<40x64xf32>
    %c0_20 = arith.constant 0 : index
    %c0_21 = arith.constant 0 : index
    %21 = vector.load %arg8[%c0_20, %c0_21] : memref<32x64xf32, #tpu.memory_space<vmem>>, vector<32x64xf32>
    %cst_22 = arith.constant dense<0.000000e+00> : vector<40x64xf32>
    %22 = tpu.matmul %14, %21, %cst_22 {dimension_numbers = #tpu.dot_dimension_numbers<[1], [0], [0], [1], [0, 0, 1, 1], [], []>} : vector<40x32xf32>, vector<32x64xf32>, vector<40x64xf32> -> vector<40x64xf32>
    %c0_23 = arith.constant 0 : index
    %c0_24 = arith.constant 0 : index
    %23 = vector.load %arg9[%c0_23, %c0_24] : memref<1x64xf32, #tpu.memory_space<vmem>>, vector<1x64xf32>
    %24 = vector.broadcast %23 : vector<1x64xf32> to vector<40x64xf32>
    %25 = arith.addf %22, %24 : vector<40x64xf32>
    %26 = arith.addf %25, %20 : vector<40x64xf32>
    %27 = math.tanh %26 : vector<40x64xf32>
    %c0_25 = arith.constant 0 : index
    %c0_26 = arith.constant 0 : index
    %28 = vector.load %arg11[%c0_25, %c0_26] : memref<64x18xf32, #tpu.memory_space<vmem>>, vector<64x18xf32>
    %cst_27 = arith.constant dense<0.000000e+00> : vector<40x18xf32>
    %29 = tpu.matmul %27, %28, %cst_27 {dimension_numbers = #tpu.dot_dimension_numbers<[1], [0], [0], [1], [0, 0, 1, 1], [], []>} : vector<40x64xf32>, vector<64x18xf32>, vector<40x18xf32> -> vector<40x18xf32>
    %c0_28 = arith.constant 0 : index
    %c0_29 = arith.constant 0 : index
    %30 = vector.load %arg12[%c0_28, %c0_29] : memref<1x18xf32, #tpu.memory_space<vmem>>, vector<1x18xf32>
    %31 = vector.broadcast %30 : vector<1x18xf32> to vector<40x18xf32>
    %32 = arith.addf %29, %31 : vector<40x18xf32>
    %33 = vector.extract_strided_slice %32 {offsets = [0, 16], sizes = [40, 1], strides = [1, 1]} : vector<40x18xf32> to vector<40x1xf32>
    %34 = math.exp %33 : vector<40x1xf32>
    %cst_30 = arith.constant 0.000000e+00 : f32
    %35 = vector.broadcast %cst_30 : f32 to vector<40x1xf32>
    %36 = arith.cmpf one, %33, %35 : vector<40x1xf32>
    %37 = arith.extui %36 : vector<40x1xi1> to vector<40x1xi32>
    %38 = arith.sitofp %37 : vector<40x1xi32> to vector<40x1xf32>
    %39 = arith.mulf %34, %38 : vector<40x1xf32>
    %40 = vector.broadcast %39 : vector<40x1xf32> to vector<40x18xf32>
    %41 = arith.mulf %40, %32 : vector<40x18xf32>
    %cst_31 = arith.constant dense<0.000000e+00> : vector<8x18xf32>
    %42 = tpu.matmul %1, %41, %cst_31 {dimension_numbers = #tpu.dot_dimension_numbers<[1], [0], [0], [1], [0, 0, 1, 1], [], []>} : vector<8x40xf32>, vector<40x18xf32>, vector<8x18xf32> -> vector<8x18xf32>
    %43 = vector.extract_strided_slice %42 {offsets = [0, 17], sizes = [8, 1], strides = [1, 1]} : vector<8x18xf32> to vector<8x1xf32>
    %44 = tpu.reciprocal %43 : vector<8x1xf32> -> vector<8x1xf32>
    %45 = vector.extract_strided_slice %42 {offsets = [0, 0], sizes = [8, 16], strides = [1, 1]} : vector<8x18xf32> to vector<8x16xf32>
    %46 = vector.broadcast %44 : vector<8x1xf32> to vector<8x16xf32>
    %47 = arith.mulf %45, %46 : vector<8x16xf32>
    %c0_32 = arith.constant 0 : index
    %c0_33 = arith.constant 0 : index
    %48 = vector.load %arg13[%c0_32, %c0_33] : memref<8x16xf32, #tpu.memory_space<vmem>>, vector<8x16xf32>
    tpu.vector_store %arg13[%c0_32, %c0_33], %47 {strides = array<i32>} : memref<8x16xf32, #tpu.memory_space<vmem>>, vector<8x16xf32>,
    return
  }
  func.func @transform_0(%arg0: i32) -> (i32, i32) {
    %c0_i32 = arith.constant 0 : i32
    %c0_i32_0 = arith.constant 0 : i32
    return %arg0, %c0_i32 : i32, i32
  }
  func.func @transform_1(%arg0: i32) -> (i32, i32) {
    %c0_i32 = arith.constant 0 : i32
    %c0_i32_0 = arith.constant 0 : i32
    %c0_i32_1 = arith.constant 0 : i32
    return %c0_i32, %c0_i32_0 : i32, i32
  }
  func.func @transform_2(%arg0: i32) -> (i32, i32) {
    %c0_i32 = arith.constant 0 : i32
    %c0_i32_0 = arith.constant 0 : i32
    %c0_i32_1 = arith.constant 0 : i32
    return %c0_i32, %c0_i32_0 : i32, i32
  }
  func.func @transform_3(%arg0: i32) -> (i32, i32) {
    %c0_i32 = arith.constant 0 : i32
    %c0_i32_0 = arith.constant 0 : i32
    %c0_i32_1 = arith.constant 0 : i32
    return %c0_i32, %c0_i32_0 : i32, i32
  }
  func.func @transform_4(%arg0: i32) -> (i32, i32) {
    %c0_i32 = arith.constant 0 : i32
    %c0_i32_0 = arith.constant 0 : i32
    %c0_i32_1 = arith.constant 0 : i32
    return %c0_i32, %c0_i32_0 : i32, i32
  }
  func.func @transform_5(%arg0: i32) -> (i32, i32) {
    %c0_i32 = arith.constant 0 : i32
    %c0_i32_0 = arith.constant 0 : i32
    %c0_i32_1 = arith.constant 0 : i32
    return %c0_i32, %c0_i32_0 : i32, i32
  }
  func.func @transform_6(%arg0: i32) -> (i32, i32) {
    %c0_i32 = arith.constant 0 : i32
    %c0_i32_0 = arith.constant 0 : i32
    %c0_i32_1 = arith.constant 0 : i32
    return %c0_i32, %c0_i32_0 : i32, i32
  }
  func.func @transform_7(%arg0: i32) -> (i32, i32) {
    %c0_i32 = arith.constant 0 : i32
    %c0_i32_0 = arith.constant 0 : i32
    %c0_i32_1 = arith.constant 0 : i32
    return %c0_i32, %c0_i32_0 : i32, i32
  }
  func.func @transform_8(%arg0: i32) -> (i32, i32) {
    %c0_i32 = arith.constant 0 : i32
    %c0_i32_0 = arith.constant 0 : i32
    %c0_i32_1 = arith.constant 0 : i32
    return %c0_i32, %c0_i32_0 : i32, i32
  }
  func.func @transform_9(%arg0: i32) -> (i32, i32) {
    %c0_i32 = arith.constant 0 : i32
    %c0_i32_0 = arith.constant 0 : i32
    %c0_i32_1 = arith.constant 0 : i32
    return %c0_i32, %c0_i32_0 : i32, i32
  }
  func.func @transform_10(%arg0: i32) -> (i32, i32) {
    %c0_i32 = arith.constant 0 : i32
    %c0_i32_0 = arith.constant 0 : i32
    %c0_i32_1 = arith.constant 0 : i32
    return %c0_i32, %c0_i32_0 : i32, i32
  }
  func.func @transform_11(%arg0: i32) -> (i32, i32) {
    %c0_i32 = arith.constant 0 : i32
    %c0_i32_0 = arith.constant 0 : i32
    %c0_i32_1 = arith.constant 0 : i32
    return %c0_i32, %c0_i32_0 : i32, i32
  }
  func.func @transform_12(%arg0: i32) -> (i32, i32) {
    %c0_i32 = arith.constant 0 : i32
    %c0_i32_0 = arith.constant 0 : i32
    return %arg0, %c0_i32 : i32, i32
  }
}

</mosaic_0001>

<bundles_post_ra>
// kernel: tpu_custom_call.1
= control target key start
LH: loop header
LB: loop body
LE: loop exit
PB: predicated region body
PF: predicated region fallthrough
CT: control target
= control target key end

     0   :  { %vm75_vm0 = vcmask 1044480   ;;  %vm59_vm1 = vcmask 105472   ;;  %s856_s0 = inlined_call_operand.vmem [shape: f32[40,13], index: 0, kind: input, shape index: {}]   ;;  %s857_s1 = inlined_call_operand.vmem [shape: f32[8,40], index: 1, kind: input, shape index: {}]   ;;  %s858_s2 = inlined_call_operand.vmem [shape: f32[40,8], index: 2, kind: input, shape index: {}]   ;;  %s859_s3 = inlined_call_operand.vmem [shape: f32[13,32], index: 3, kind: input, shape index: {}]   ;;  %s860_s4 = inlined_call_operand.vmem [shape: f32[1,32], index: 4, kind: input, shape index: {}]   ;;  %s861_s5 = inlined_call_operand.vmem [shape: f32[32,32], index: 5, kind: input, shape index: {}]   ;;  %s862_s6 = inlined_call_operand.vmem [shape: f32[1,32], index: 6, kind: input, shape index: {}]   ;;  %s863_s7 = inlined_call_operand.vmem [shape: f32[32,64], index: 7, kind: input, shape index: {}]   ;;  %s864_s8 = inlined_call_operand.vmem [shape: f32[1,64], index: 8, kind: input, shape index: {}]   ;;  %s865_s9 = inlined_call_operand.vmem [shape: f32[32,64], index: 9, kind: input, shape index: {}]   ;;  %s866_s10 = inlined_call_operand.vmem [shape: f32[64,18], index: 10, kind: input, shape index: {}]   ;;  %s867_s11 = inlined_call_operand.vmem [shape: f32[1,18], index: 11, kind: input, shape index: {}]   ;;  %s868_s12 = inlined_call_operand.hbm [shape: f32[8,16], index: 12, kind: output, shape index: {}]  }
   0x1   :  { %v54_v0 = vld [vmem:[%s859_s3 + $0x8] sm:$0x1f]  ;;  %v53_v1 = vld [vmem:[%s859_s3] sm:$0xff]  ;;  %v44_v3 = vld [vmem:[%s856_s0 + $0x10] sm:$0xff] }
   0x2   :  { %520 = vmatpush.msk.msra.mxu0 %vm75_vm0, %v54_v0  ;;  %v42_v2 = vld [vmem:[%s856_s0] sm:$0xff]  ;;  %554 = vmatpush.msk.msra.mxu1 %vm75_vm0, %v54_v0  ;;  %v45_v4 = vld [vmem:[%s856_s0 + $0x18] sm:$0xff] }
   0x3   :  { %555 = vmatpush.msk.msra.mxu2 %vm75_vm0, %v54_v0  ;;  %556 = vmatpush.msk.msra.mxu3 %vm75_vm0, %v54_v0  ;;  %v46_v5 = vld [vmem:[%s856_s0 + $0x20] sm:$0xff] }
   0x4   :  { %94 = vmatpush.msra.mxu0 %v53_v1  ;;  %557 = vmatpush.msra.mxu1 %v53_v1 }
   0x5   :  { %521 = vmatmul.msk.f32.vlgmr.msra.gmra.mxu0 %vm59_vm1, %v42_v2  ;;  %523 = vmatmul.msk.f32.vlgmr.msra.gmra.mxu1 %vm59_vm1, %v44_v3 }
   0x6   :  { %17 = vsyncpa [#allocation3], 0  ;;  %558 = vmatpush.msra.mxu2 %v53_v1  ;;  %559 = vmatpush.msra.mxu3 %v53_v1  ;;  %v43_v6 = vld [vmem:[%s856_s0 + $0x8] sm:$0xff]  ;;  %v119_v7 = vld [vmem:[%s861_s5 + $0x18] sm:$0xff]  ;;  %vm124_vm2 = vcmask 261120   ;;  %vm177_vm3 = vcmask 326656  }
   0x7   :  { %524 = vmatmul.msk.f32.vlgmr.msra.gmra.mxu2 %vm59_vm1, %v45_v4  ;;  %525 = vmatmul.msk.f32.vlgmr.msra.gmra.mxu3 %vm59_vm1, %v46_v5  ;;  %v118_v8 = vld [vmem:[%s861_s5 + $0x10] sm:$0xff]  ;;  %v117_v9 = vld [vmem:[%s861_s5 + $0x8] sm:$0xff]  ;;  %v116_v10 = vld [vmem:[%s861_s5] sm:$0xff]  ;;  %vm229_vm4 = vcmask 64512   ;;  %vm354_vm5 = vcmask 523264   ;;  %s511_s24 = sshll.u32 %s868_s12, 4  ;;  %s512_s24 = int_to_ptr.hbm [resolvable:$true] %s511_s24 }
   0x8   :  { %152 = vmatpush.msrb.mxu1 %v119_v7  ;;  %v569_v11 = vld [vmem:[%s860_s4] ss:$0 sm:$0xff]  ;;  %v280_v44 = vld [vmem:[%s863_s7 + $0x18] sm:$0xff]  ;;  %v279_v45 = vld [vmem:[%s863_s7 + $0x10] sm:$0xff]  ;;  %vm502_vm15 = vcmask 130048  }
   0x9   :  { %v570_v31 = vld [vmem:[%s862_s6] ss:$0 sm:$0xff]  ;;  %v278_v46 = vld [vmem:[%s863_s7 + $0x8] sm:$0xff]  ;;  %v205_v48 = vld [vmem:[%s865_s9 + $0x18] sm:$0xff] }
   0xa   :  { %153 = vmatpush.msrb.mxu1 %v118_v8  ;;  %v762_v42 = vld [vmem:[%s857_s1] sm:$0xff]  ;;  %v204_v49 = vld [vmem:[%s865_s9 + $0x10] sm:$0xff]  ;;  %221 = vmatpush.msrb.mxu3 %v205_v48  ;;  %v203_v50 = vld [vmem:[%s865_s9 + $0x8] sm:$0xff] }
   0xb   :  { %v277_v47 = vld [vmem:[%s863_s7] sm:$0xff]  ;;  %v349_v56 = vld [vmem:[%s866_s10 + $0x38] sm:$0xff]  ;;  %v348_v57 = vld [vmem:[%s866_s10 + $0x30] sm:$0xff] }
   0xc   :  { %154 = vmatpush.msrb.mxu1 %v117_v9  ;;  %222 = vmatpush.msrb.mxu3 %v204_v49  ;;  %v202_v51 = vld [vmem:[%s865_s9] sm:$0xff]  ;;  %v347_v58 = vld [vmem:[%s866_s10 + $0x28] sm:$0xff]  ;;  %v50_v60 = vld [vmem:[%s858_s2 + $0x10] sm:$0xff] }
   0xd   :  { %522 = vmatmul.msk.f32.gmra.mxu0 %vm59_vm1, %v43_v6  ;;  %v48_v54 = vld [vmem:[%s858_s2] sm:$0xff]  ;;  %v49_v59 = vld [vmem:[%s858_s2 + $0x8] sm:$0xff]  ;;  %v51_v61 = vld [vmem:[%s858_s2 + $0x18] sm:$0xff] }
   0xe   :  { %155 = vmatpush.msrb.mxu1 %v116_v10  ;;  %223 = vmatpush.msrb.mxu3 %v203_v50  ;;  %v52_v62 = vld [vmem:[%s858_s2 + $0x20] sm:$0xff]  ;;  %v345_v0 = vld [vmem:[%s866_s10 + $0x18] sm:$0xff]  ;;  %v344_v1 = vld [vmem:[%s866_s10 + $0x10] sm:$0xff] }
   0xf   :  { %378 = vmatpush.msrb.mxu0 %v349_v56  ;;  %v346_v63 = vld [vmem:[%s866_s10 + $0x20] sm:$0xff]  ;;  %v343_v2 = vld [vmem:[%s866_s10 + $0x8] sm:$0xff] }
  0x10   :  { %224 = vmatpush.msrb.mxu3 %v202_v51  ;;  %v342_v3 = vld [vmem:[%s866_s10] sm:$0xff] }
  0x11   :  { %379 = vmatpush.msrb.mxu0 %v348_v57  ;;  %v571_v5 = vld [vmem:[%s864_s8] ss:$0 sm:$0xff] }
  0x13   :  { %380 = vmatpush.msrb.mxu0 %v347_v58 }
  0x15   :  { %381 = vmatpush.msrb.mxu0 %v346_v63 }
  0x17   :  { %382 = vmatpush.msrb.mxu0 %v345_v0 }
  0x19   :  { %383 = vmatpush.msrb.mxu0 %v344_v1 }
  0x1b   :  { %384 = vmatpush.msrb.mxu0 %v343_v2 }
  0x1d   :  { %385 = vmatpush.msrb.mxu0 %v342_v3 }
  0x82   :  { %v96_v12 = vpop.f32.mrf.mxu0  ;;  %v102_v17 = vpop.f32.mrf.mxu1 }
  0x83   :  { %v97_v13 = vadd.f32 %v569_v11, %v96_v12  ;;  %v103_v18 = vadd.f32 %v569_v11, %v102_v17 }
  0x85   :  { %573 = vtanh.f32 %v97_v13 }
  0x8a   :  { %v99_v14 = vpop.f32.mrf.mxu0  ;;  %v105_v20 = vpop.f32.mrf.mxu2 }
  0x8b   :  { %v574_v15 = vpop.eup %573  ;;  %v100_v16 = vadd.f32 %v569_v11, %v99_v14  ;;  %v106_v21 = vadd.f32 %v569_v11, %v105_v20  ;;  %v108_v23 = vpop.f32.mrf.mxu3 }
  0x8c   :  { %526 = vmatmul.msk.f32.vlgmr.msrb.gmra.mxu1 %vm124_vm2, %v574_v15  ;;  %v109_v24 = vadd.f32 %v569_v11, %v108_v23 }
  0x8d   :  { %575 = vtanh.f32 %v100_v16 }
  0x8e   :  { %577 = vtanh.f32 %v103_v18 }
  0x8f   :  { %579 = vtanh.f32 %v106_v21 }
  0x90   :  { %581 = vtanh.f32 %v109_v24 }
  0x93   :  { %v576_v19 = vpop.eup %575 }
  0x94   :  { %527 = vmatmul.msk.f32.gmra.mxu1 %vm124_vm2, %v576_v19  ;;  %v578_v22 = vpop.eup %577 }
  0x95   :  { %v580_v25 = vpop.eup %579 }
  0x96   :  { %v582_v26 = vpop.eup %581 }
  0x9c   :  { %528 = vmatmul.msk.f32.gmra.mxu1 %vm124_vm2, %v578_v22 }
  0xa4   :  { %529 = vmatmul.msk.f32.gmra.mxu1 %vm124_vm2, %v580_v25 }
  0xac   :  { %530 = vmatmul.msk.f32.gmra.mxu1 %vm124_vm2, %v582_v26 }
 0x109   :  { %v157_v27 = vpop.f32.mrf.mxu1 }
 0x10a   :  { %v158_v37 = vadd.f32 %v570_v31, %v157_v27 }
 0x111   :  { %v160_v28 = vpop.f32.mrf.mxu1 }
 0x112   :  { %v161_v36 = vadd.f32 %v570_v31, %v160_v28 }
 0x119   :  { %v163_v29 = vpop.f32.mrf.mxu1 }
 0x11a   :  { %v164_v35 = vadd.f32 %v570_v31, %v163_v29 }
 0x121   :  { %v166_v30 = vpop.f32.mrf.mxu1 }
 0x122   :  { %v167_v33 = vadd.f32 %v570_v31, %v166_v30  ;;  %v641_v30 = vmov 16  }
 0x123   :  { %566 = vset.pattern.permute.xlu2 %v641_v30  ;;  %565 = vset.pattern.permute.xlu1 %v641_v30 }
 0x124   :  { %564 = vset.pattern.permute.xlu0 %v641_v30 }
 0x129   :  { %v169_v32 = vpop.f32.mrf.mxu1 }
 0x12a   :  { %v170_v34 = vadd.f32 %v570_v31, %v169_v32  ;;  %v572_v31 = vld [vmem:[%s867_s11] ss:$0 sm:$0xff]  ;;  %s644_s11 = smov [#allocation2]  }
 0x12b   :  { %s509_s22 = sshll.u32 %s644_s11, 4  ;;  %s510_s22 = int_to_ptr.vmem [resolvable:$true] %s509_s22 }
 0x12c   :  { %583 = vtanh.f32 %v170_v34 }
 0x12d   :  { %585 = vtanh.f32 %v167_v33 }
 0x12e   :  { %587 = vtanh.f32 %v164_v35 }
 0x12f   :  { %589 = vtanh.f32 %v161_v36 }
 0x130   :  { %591 = vtanh.f32 %v158_v37  ;;  %v642_v37 = vmov 0.0  }
 0x132   :  { %v584_v38 = vpop.eup %583 }
 0x133   :  { %192 = vmatpush.msrb.mxu2 %v584_v38  ;;  %v586_v39 = vpop.eup %585 }
 0x134   :  { %v588_v40 = vpop.eup %587 }
 0x135   :  { %193 = vmatpush.msrb.mxu2 %v586_v39  ;;  %v590_v41 = vpop.eup %589 }
 0x136   :  { %v592_v43 = vpop.eup %591 }
 0x137   :  { %194 = vmatpush.msrb.mxu2 %v588_v40 }
 0x139   :  { %195 = vmatpush.msrb.mxu2 %v590_v41 }
 0x13b   :  { %196 = vmatpush.msrb.mxu2 %v592_v43 }
 0x13c   :  { %531 = vmatmul.msk.f32.vlgmr.msrb.gmra.mxu2 %vm177_vm3, %v762_v42 }
 0x13d   :  { %312 = vmatpush.msra.mxu2 %v280_v44 }
 0x13f   :  { %313 = vmatpush.msra.mxu2 %v279_v45 }
 0x141   :  { %314 = vmatpush.msra.mxu2 %v278_v46 }
 0x143   :  { %315 = vmatpush.msra.mxu2 %v277_v47 }
 0x144   :  { %538 = vmatmul.msk.f32.vlgmr.msra.gmra.mxu2 %vm124_vm2, %v592_v43 }
 0x14c   :  { %539 = vmatmul.msk.f32.gmra.mxu2 %vm124_vm2, %v590_v41 }
 0x154   :  { %540 = vmatmul.msk.f32.gmra.mxu2 %vm124_vm2, %v588_v40 }
 0x15c   :  { %541 = vmatmul.msk.f32.gmra.mxu2 %vm124_vm2, %v586_v39 }
 0x164   :  { %542 = vmatmul.msk.f32.gmra.mxu2 %vm124_vm2, %v584_v38 }
 0x1bf   :  { %v198_v52 = vpop.f32.mrf.mxu2 }
 0x1c0   :  { %v201_v53 = vmul.f32 0.2, %v198_v52 }
 0x1c2   :  { %532 = vmatmul.msk.f32.vlgmr.msrb.gmra.mxu3 %vm124_vm2, %v201_v53 }
 0x1c7   :  { %v317_v4 = vpop.f32.mrf.mxu2 }
 0x1c8   :  { %v318_v7 = vadd.f32 %v571_v5, %v317_v4 }
 0x1cf   :  { %v320_v6 = vpop.f32.mrf.mxu2 }
 0x1d0   :  { %v321_v10 = vadd.f32 %v571_v5, %v320_v6 }
 0x1d7   :  { %v323_v11 = vpop.f32.mrf.mxu2 }
 0x1d8   :  { %v324_v15 = vadd.f32 %v571_v5, %v323_v11 }
 0x1df   :  { %v326_v19 = vpop.f32.mrf.mxu2 }
 0x1e0   :  { %v327_v20 = vadd.f32 %v571_v5, %v326_v19 }
 0x1e7   :  { %v329_v24 = vpop.f32.mrf.mxu2 }
 0x1e8   :  { %v330_v25 = vadd.f32 %v571_v5, %v329_v24 }
 0x245   :  { %v226_v55 = vpop.f32.mrf.mxu3 }
 0x246   :  { %260 = vmatpush.msra.mxu3 %v226_v55 }
 0x247   :  { %533 = vmatmul.msk.f32.vlgmr.msra.gmra.mxu3 %vm229_vm4, %v48_v54 }
 0x24f   :  { %534 = vmatmul.msk.f32.gmra.mxu3 %vm229_vm4, %v49_v59 }
 0x257   :  { %535 = vmatmul.msk.f32.gmra.mxu3 %vm229_vm4, %v50_v60 }
 0x25f   :  { %536 = vmatmul.msk.f32.gmra.mxu3 %vm229_vm4, %v51_v61 }
 0x267   :  { %537 = vmatmul.msk.f32.gmra.mxu3 %vm229_vm4, %v52_v62 }
 0x2ca   :  { %v262_v8 = vpop.f32.mrf.mxu3 }
 0x2cb   :  { %v332_v9 = vadd.f32 %v318_v7, %v262_v8 }
 0x2cd   :  { %593 = vtanh.f32 %v332_v9 }
 0x2d2   :  { %v265_v12 = vpop.f32.mrf.mxu3 }
 0x2d3   :  { %v594_v13 = vpop.eup %593  ;;  %v333_v14 = vadd.f32 %v321_v10, %v265_v12  ;;  %v643_v10 = vmov 17  }
 0x2d4   :  { %543 = vmatmul.msk.f32.vlgmr.msrb.gmra.mxu0 %vm354_vm5, %v594_v13 }
 0x2d5   :  { %595 = vtanh.f32 %v333_v14 }
 0x2da   :  { %v268_v16 = vpop.f32.mrf.mxu3 }
 0x2db   :  { %v596_v17 = vpop.eup %595  ;;  %v334_v18 = vadd.f32 %v324_v15, %v268_v16 }
 0x2dc   :  { %544 = vmatmul.msk.f32.gmra.mxu0 %vm354_vm5, %v596_v17 }
 0x2dd   :  { %597 = vtanh.f32 %v334_v18 }
 0x2e2   :  { %v271_v21 = vpop.f32.mrf.mxu3 }
 0x2e3   :  { %v598_v22 = vpop.eup %597  ;;  %v335_v23 = vadd.f32 %v327_v20, %v271_v21 }
 0x2e4   :  { %545 = vmatmul.msk.f32.gmra.mxu0 %vm354_vm5, %v598_v22 }
 0x2e5   :  { %599 = vtanh.f32 %v335_v23 }
 0x2ea   :  { %v274_v26 = vpop.f32.mrf.mxu3 }
 0x2eb   :  { %v600_v27 = vpop.eup %599  ;;  %v336_v28 = vadd.f32 %v330_v25, %v274_v26 }
 0x2ec   :  { %546 = vmatmul.msk.f32.gmra.mxu0 %vm354_vm5, %v600_v27 }
 0x2ed   :  { %601 = vtanh.f32 %v336_v28 }
 0x2f3   :  { %v602_v29 = vpop.eup %601 }
 0x2f4   :  { %547 = vmatmul.msk.f32.gmra.mxu0 %vm354_vm5, %v602_v29 }
 0x351   :  { %v387_v32 = vpop.f32.mrf.mxu0 }
 0x352   :  { %v388_v33 = vadd.f32 %v572_v31, %v387_v32 }
 0x354   :  { %v402_v34 = vmul.f32 1.442695, %v388_v33  ;;  %vm412_vm6 = vcmp.ne.f32.partialorder %v388_v33, 0.0 }
 0x355   :  { %v548_v38 = vsel %vm412_vm6, 1.0, %v642_v37 }
 0x356   :  { %603 = vpow2.f32 %v402_v34 }
 0x359   :  { %v390_v35 = vpop.f32.mrf.mxu0 }
 0x35a   :  { %v391_v43 = vadd.f32 %v572_v31, %v390_v35 }
 0x35c   :  { %v604_v36 = vpop.eup %603  ;;  %v404_v45 = vmul.f32 1.442695, %v391_v43  ;;  %vm413_vm8 = vcmp.ne.f32.partialorder %v391_v43, 0.0 }
 0x35d   :  { %v427_v39 = vmul.f32 %v604_v36, %v548_v38  ;;  %v549_v55 = vsel %vm413_vm8, 1.0, %v642_v37 }
 0x35f   :  { %434 = vperm.xlu2 %566, %v427_v39  }
 0x361   :  { %v393_v40 = vpop.f32.mrf.mxu0 }
 0x362   :  { %v394_v41 = vadd.f32 %v572_v31, %v393_v40 }
 0x364   :  { %v406_v44 = vmul.f32 1.442695, %v394_v41  ;;  %vm414_vm7 = vcmp.ne.f32.partialorder %v394_v41, 0.0 }
 0x365   :  { %v550_v48 = vsel %vm414_vm7, 1.0, %v642_v37 }
 0x366   :  { %605 = vpow2.f32 %v406_v44 }
 0x367   :  { %607 = vpow2.f32 %v404_v45  ;;  %567 = vset.pattern.permute.xlu2 %v643_v10 }
 0x369   :  { %v396_v46 = vpop.f32.mrf.mxu0 }
 0x36a   :  { %v397_v53 = vadd.f32 %v572_v31, %v396_v46 }
 0x36c   :  { %v606_v47 = vpop.eup %605  ;;  %v408_v57 = vmul.f32 1.442695, %v397_v53  ;;  %vm415_vm10 = vcmp.ne.f32.partialorder %v397_v53, 0.0 }
 0x36d   :  { %v429_v49 = vmul.f32 %v606_v47, %v550_v48  ;;  %v608_v51 = vpop.eup %607  ;;  %v551_v62 = vsel %vm415_vm10, 1.0, %v642_v37 }
 0x36e   :  { %v428_v56 = vmul.f32 %v608_v51, %v549_v55 }
 0x36f   :  { %444 = vperm.xlu1 %565, %v429_v49  }
 0x371   :  { %v399_v50 = vpop.f32.mrf.mxu0 }
 0x372   :  { %v400_v52 = vadd.f32 %v572_v31, %v399_v50 }
 0x374   :  { %v410_v54 = vmul.f32 1.442695, %v400_v52  ;;  %vm416_vm9 = vcmp.ne.f32.partialorder %v400_v52, 0.0 }
 0x375   :  { %v552_v59 = vsel %vm416_vm9, 1.0, %v642_v37 }
 0x376   :  { %609 = vpow2.f32 %v410_v54 }
 0x377   :  { %439 = vperm.xlu1 %565, %v428_v56   ;;  %611 = vpow2.f32 %v408_v57 }
 0x37c   :  { %v610_v58 = vpop.eup %609 }
 0x37d   :  { %v431_v60 = vmul.f32 %v610_v58, %v552_v59  ;;  %v612_v61 = vpop.eup %611 }
 0x37e   :  { %v430_v63 = vmul.f32 %v612_v61, %v551_v62 }
 0x37f   :  { %454 = vperm.xlu0 %564, %v431_v60  }
 0x387   :  { %449 = vperm.xlu0 %564, %v430_v63  }
 0x38f   :  { %568 = vset.pattern.permute.xlu0 %v643_v10 }
 0x3b9   :  { %v435_v7 = vpop.permute.xlu2 %434 }
 0x3ba   :  { %v457_v9 = vmul.f32 %v435_v7, %v388_v33 }
 0x3e1   :  { %v445_v0 = vpop.permute.xlu1 %444 }
 0x3e2   :  { %v459_v6 = vmul.f32 %v445_v0, %v394_v41 }
 0x3e9   :  { %v440_v5 = vpop.permute.xlu1 %439 }
 0x3ea   :  { %v458_v8 = vmul.f32 %v440_v5, %v391_v43 }
 0x3f1   :  { %v455_v1 = vpop.permute.xlu0 %454 }
 0x3f2   :  { %v461_v2 = vmul.f32 %v455_v1, %v400_v52 }
 0x3f4   :  { %473 = vmatpush.msra.mxu1 %v461_v2 }
 0x3f9   :  { %v450_v3 = vpop.permute.xlu0 %449 }
 0x3fa   :  { %v460_v4 = vmul.f32 %v450_v3, %v397_v53 }
 0x3fc   :  { %474 = vmatpush.msra.mxu1 %v460_v4 }
 0x3fe   :  { %475 = vmatpush.msra.mxu1 %v459_v6 }
 0x400   :  { %476 = vmatpush.msra.mxu1 %v458_v8 }
 0x402   :  { %477 = vmatpush.msra.mxu1 %v457_v9 }
 0x403   :  { %553 = vmatmul.msk.f32.vlgmr.msra.gmra.mxu1 %vm177_vm3, %v762_v42 }
 0x480   :  { %v479_v11 = vpop.f32.mrf.mxu1 }
 0x481   :  { %613 = vrcp.f32 %v479_v11  ;;  %v493_v15 = vand.u32 2147483648, %v479_v11  ;;  %v491_v17 = vand.u32 2147483647, %v479_v11  ;;  %vm487_vm12 = vweird.f32 %v479_v11 }
 0x483   :  { %v494_v19 = vor.u32 1.1754944e-38, %v493_v15  ;;  %vm492_vm14 = vcmp.eq.f32.partialorder %v491_v17, 8.507059e+37 }
 0x487   :  { %v614_v12 = vpop.eup %613 }
 0x488   :  { %v483_v13 = vmul.f32 %v614_v12, %v479_v11  ;;  %vm488_vm11 = vweird.f32 %v614_v12 }
 0x489   :  { %vm489_vm13 = vmor %vm487_vm12, %vm488_vm11 }
 0x48a   :  { %v484_v14 = vsub.f32 1.0, %v483_v13 }
 0x48c   :  { %v485_v16 = vmul.f32 %v614_v12, %v484_v14 }
 0x48e   :  { %v486_v18 = vadd.f32 %v614_v12, %v485_v16 }
 0x490   :  { %v490_v20 = vsel %vm489_vm13, %v614_v12, %v486_v18 }
 0x491   :  { %v495_v21 = vsel %vm492_vm14, %v494_v19, %v490_v20 }
 0x492   :  { %498 = vperm.xlu2 %567, %v495_v21  }
 0x4ec   :  { %v499_v42 = vpop.permute.xlu2 %498 }
 0x4ed   :  { %v501_v22 = vmul.f32 %v499_v42, %v479_v11 }
 0x4ef   :  { %503 = vst.msk [vmem:[#allocation2] sm:$0xff] %vm502_vm15, %v501_v22 }
 0x4f0   :  { %514 = dma.vmem_to_hbm [thread:$0]  %s510_s22, 128, %s512_s24, [#allocation3]  }
 0x4f1   :  { %639 = dma.done.wait [#allocation3], 128  }
 0x4f2   :  { %640 = vsyncadd [#allocation3], 4294967168 }
 0x4f3   :  { %519 = vsyncpa [#allocation3], 1 }

</bundles_post_ra>
